<compile_context>
chip_gen: v6e
topology: v6e:2x2x1
jax: 0.10.0
libtpu: 0.0.40
codegen_flags: <defaults>
</compile_context>

<pallas_src>
import functools

import jax
import jax.numpy as jnp
from jax.experimental import pallas as pl
from jax.experimental.pallas import tpu as pltpu

_TWO_PI = 6.283185307179586
_INV_2POW24 = 1.0 / float(1 << 24)


def _round_up(x, m):
    return (x + m - 1) // m * m


def _bits_to_uniform(bits_u32):
    """uint32 random bits -> float32 uniform in [0, 1) (top 24 bits, exact)."""
    top24 = (bits_u32 >> jnp.uint32(8)).astype(jnp.int32)     # < 2**24, sign-safe
    return top24.astype(jnp.float32) * jnp.float32(_INV_2POW24)


def _sample_kernel(bits1_ref, bits2_ref, loc_ref, scale_ref, out_ref):
    # Tile shapes: bits1/bits2 are (TB//2, D); out is (TB, D); loc/scale (1, D).
    half = bits1_ref.shape[0]

    u1 = 1.0 - _bits_to_uniform(bits1_ref[...])   # in (0, 1]: safe for log
    u2 = _bits_to_uniform(bits2_ref[...])         # in [0, 1)

    # Box-Muller, using BOTH outputs of each pair (halves EUP + bits traffic).
    r = jnp.sqrt(-2.0 * jnp.log(u1))
    theta = jnp.float32(_TWO_PI) * u2
    z1 = r * jnp.cos(theta)
    z2 = r * jnp.sin(theta)

    loc = loc_ref[...]       # (1, D): broadcasts over sublanes
    scale = scale_ref[...]   # (1, D)

    out_ref[:half, :] = (loc + scale * z1).astype(out_ref.dtype)
    out_ref[half:, :] = (loc + scale * z2).astype(out_ref.dtype)


@functools.partial(jax.jit, static_argnames=("bs",))
def simple_normal_forward(loc, var, key, *, bs):
    """Pallas equivalent of SimpleNormal(loc, var).forward(bs)."""
    D = loc.size
    D_pad = max(128, _round_up(D, 128))           # lane-dense output

    # Batch tiling: TB rows/tile, multiple of 16 so each Box-Muller half-tile
    # has a multiple-of-8 sublane count.  Cap the tile so (out + bits) stays a
    # few MiB even double-buffered (fits v7x's smaller VMEM too).
    bs_pad = _round_up(bs, 16)
    tb_cap = max(16, ((1 << 19) // D_pad) // 16 * 16)
    TB = min(bs_pad, 512, tb_cap)
    bs_pad = _round_up(bs_pad, TB)
    half_rows = bs_pad // 2

    loc_flat = jnp.pad(loc.reshape(1, D).astype(jnp.float32),
                       ((0, 0), (0, D_pad - D)))
    scale_flat = jnp.pad(var.reshape(1, D).astype(jnp.float32),
                         ((0, 0), (0, D_pad - D)))   # torch Normal 2nd arg = scale

    # TODO(synk): switch to in-kernel pltpu.prng_seed/prng_random_bits (seeded
    # per tile with pl.program_id) in a TPU-only build; those primitives have
    # no interpret-mode lowering, so bits are drawn host-side here.
    k1, k2 = jax.random.split(key)
    bits1 = jax.random.bits(k1, (half_rows, D_pad), dtype=jnp.uint32)
    bits2 = jax.random.bits(k2, (half_rows, D_pad), dtype=jnp.uint32)

    out = pl.pallas_call(
        _sample_kernel,
        out_shape=jax.ShapeDtypeStruct((bs_pad, D_pad), jnp.float32),
        grid=(bs_pad // TB,),
        in_specs=[
            pl.BlockSpec((TB // 2, D_pad), lambda i: (i, 0)),   # bits1
            pl.BlockSpec((TB // 2, D_pad), lambda i: (i, 0)),   # bits2
            pl.BlockSpec((1, D_pad), lambda i: (0, 0)),         # loc
            pl.BlockSpec((1, D_pad), lambda i: (0, 0)),         # scale (std)
        ],
        out_specs=pl.BlockSpec((TB, D_pad), lambda i: (i, 0)),
        compiler_params=pltpu.CompilerParams(
            dimension_semantics=("parallel",)),
    )(bits1, bits2, loc_flat, scale_flat)

    return out[:bs, :D].reshape((bs,) + loc.shape)


if __name__ == "__main__":
    key = jax.random.PRNGKey(0)
    k_loc, k_var, k_sample = jax.random.split(key, 3)

    # Deterministic synthetic parameters (loc.shape = (8, 16) -> D = 128).
    loc = jax.random.normal(k_loc, (8, 16), dtype=jnp.float32)
    var = jax.nn.softplus(jax.random.normal(k_var, (8, 16), dtype=jnp.float32)) + 0.1

    bs = 8
    samples = simple_normal_forward(loc, var, k_sample, bs=bs)
    samples = jax.block_until_ready(samples)

    assert samples.shape == (bs,) + loc.shape, samples.shape
    assert samples.dtype == jnp.float32
    assert bool(jnp.all(jnp.isfinite(samples)))

    print("KERNEL_OK")
</pallas_src>

<mosaic_0001>
module attributes {stable_mosaic.version = 11 : i64} {
  func.func @_sample_kernel(%arg0: i32, %arg1: memref<8x128xi32, #tpu.memory_space<vmem>>, %arg2: memref<8x128xi32, #tpu.memory_space<vmem>>, %arg3: memref<1x128xf32, #tpu.memory_space<vmem>>, %arg4: memref<1x128xf32, #tpu.memory_space<vmem>>, %arg5: memref<16x128xf32, #tpu.memory_space<vmem>>) attributes {dimension_semantics = [#tpu.dimension_semantics<parallel>], iteration_bounds = array<i64: 1>, scalar_prefetch = 0 : i64, scratch_operands = 0 : i64, tpu.core_type = #tpu.core_type<tc>, window_params = [{transform_indices = @transform_0, window_bounds = array<i64: 8, 128>}, {transform_indices = @transform_1, window_bounds = array<i64: 8, 128>}, {pipeline_mode = #tpu.pipeline_mode<synchronous>, transform_indices = @transform_2, window_bounds = array<i64: 1, 128>}, {pipeline_mode = #tpu.pipeline_mode<synchronous>, transform_indices = @transform_3, window_bounds = array<i64: 1, 128>}, {transform_indices = @transform_4, window_bounds = array<i64: 16, 128>}]} {
    %c0 = arith.constant 0 : index
    %c0_0 = arith.constant 0 : index
    %0 = vector.load %arg1[%c0, %c0_0] : memref<8x128xi32, #tpu.memory_space<vmem>>, vector<8x128xi32>
    %c8_i32 = arith.constant 8 : i32
    %1 = vector.broadcast %c8_i32 : i32 to vector<8x128xi32>
    %2 = arith.shrui %0, %1 : vector<8x128xi32>
    %3 = arith.sitofp %2 : vector<8x128xi32> to vector<8x128xf32>
    %cst = arith.constant 5.96046448E-8 : f32
    %4 = vector.broadcast %cst : f32 to vector<8x128xf32>
    %5 = arith.mulf %3, %4 : vector<8x128xf32>
    %cst_1 = arith.constant 1.000000e+00 : f32
    %6 = vector.broadcast %cst_1 : f32 to vector<8x128xf32>
    %7 = arith.subf %6, %5 : vector<8x128xf32>
    %c0_2 = arith.constant 0 : index
    %c0_3 = arith.constant 0 : index
    %8 = vector.load %arg2[%c0_2, %c0_3] : memref<8x128xi32, #tpu.memory_space<vmem>>, vector<8x128xi32>
    %c8_i32_4 = arith.constant 8 : i32
    %9 = vector.broadcast %c8_i32_4 : i32 to vector<8x128xi32>
    %10 = arith.shrui %8, %9 : vector<8x128xi32>
    %11 = arith.sitofp %10 : vector<8x128xi32> to vector<8x128xf32>
    %cst_5 = arith.constant 5.96046448E-8 : f32
    %12 = vector.broadcast %cst_5 : f32 to vector<8x128xf32>
    %13 = arith.mulf %11, %12 : vector<8x128xf32>
    %14 = math.log %7 : vector<8x128xf32>
    %cst_6 = arith.constant -2.000000e+00 : f32
    %15 = vector.broadcast %cst_6 : f32 to vector<8x128xf32>
    %16 = arith.mulf %15, %14 : vector<8x128xf32>
    %17 = math.sqrt %16 : vector<8x128xf32>
    %cst_7 = arith.constant 6.28318548 : f32
    %18 = vector.broadcast %cst_7 : f32 to vector<8x128xf32>
    %19 = arith.mulf %18, %13 : vector<8x128xf32>
    %20 = math.cos %19 : vector<8x128xf32>
    %21 = arith.mulf %17, %20 : vector<8x128xf32>
    %22 = math.sin %19 : vector<8x128xf32>
    %23 = arith.mulf %17, %22 : vector<8x128xf32>
    %c0_8 = arith.constant 0 : index
    %c0_9 = arith.constant 0 : index
    %24 = vector.load %arg3[%c0_8, %c0_9] : memref<1x128xf32, #tpu.memory_space<vmem>>, vector<1x128xf32>
    %c0_10 = arith.constant 0 : index
    %c0_11 = arith.constant 0 : index
    %25 = vector.load %arg4[%c0_10, %c0_11] : memref<1x128xf32, #tpu.memory_space<vmem>>, vector<1x128xf32>
    %26 = vector.broadcast %25 : vector<1x128xf32> to vector<8x128xf32>
    %27 = arith.mulf %26, %21 : vector<8x128xf32>
    %28 = vector.broadcast %24 : vector<1x128xf32> to vector<8x128xf32>
    %29 = arith.addf %28, %27 : vector<8x128xf32>
    %c0_12 = arith.constant 0 : index
    %c0_13 = arith.constant 0 : index
    %30 = vector.load %arg5[%c0_12, %c0_13] : memref<16x128xf32, #tpu.memory_space<vmem>>, vector<8x128xf32>
    tpu.vector_store %arg5[%c0_12, %c0_13], %29 {strides = array<i32>} : memref<16x128xf32, #tpu.memory_space<vmem>>, vector<8x128xf32>,
    %31 = vector.broadcast %25 : vector<1x128xf32> to vector<8x128xf32>
    %32 = arith.mulf %31, %23 : vector<8x128xf32>
    %33 = vector.broadcast %24 : vector<1x128xf32> to vector<8x128xf32>
    %34 = arith.addf %33, %32 : vector<8x128xf32>
    %c8 = arith.constant 8 : index
    %c0_14 = arith.constant 0 : index
    %35 = vector.load %arg5[%c8, %c0_14] : memref<16x128xf32, #tpu.memory_space<vmem>>, vector<8x128xf32>
    tpu.vector_store %arg5[%c8, %c0_14], %34 {strides = array<i32>} : memref<16x128xf32, #tpu.memory_space<vmem>>, vector<8x128xf32>,
    return
  }
  func.func @transform_0(%arg0: i32) -> (i32, i32) {
    %c0_i32 = arith.constant 0 : i32
    %c0_i32_0 = arith.constant 0 : i32
    return %arg0, %c0_i32 : i32, i32
  }
  func.func @transform_1(%arg0: i32) -> (i32, i32) {
    %c0_i32 = arith.constant 0 : i32
    %c0_i32_0 = arith.constant 0 : i32
    return %arg0, %c0_i32 : i32, i32
  }
  func.func @transform_2(%arg0: i32) -> (i32, i32) {
    %c0_i32 = arith.constant 0 : i32
    %c0_i32_0 = arith.constant 0 : i32
    %c0_i32_1 = arith.constant 0 : i32
    return %c0_i32, %c0_i32_0 : i32, i32
  }
  func.func @transform_3(%arg0: i32) -> (i32, i32) {
    %c0_i32 = arith.constant 0 : i32
    %c0_i32_0 = arith.constant 0 : i32
    %c0_i32_1 = arith.constant 0 : i32
    return %c0_i32, %c0_i32_0 : i32, i32
  }
  func.func @transform_4(%arg0: i32) -> (i32, i32) {
    %c0_i32 = arith.constant 0 : i32
    %c0_i32_0 = arith.constant 0 : i32
    return %arg0, %c0_i32 : i32, i32
  }
}

</mosaic_0001>

<bundles_post_ra>
// kernel: simple_normal_forward.7
= control target key start
LH: loop header
LB: loop body
LE: loop exit
PB: predicated region body
PF: predicated region fallthrough
CT: control target
= control target key end

     0   :  { %v298_v15 = vmov 683565275   ;;  %v299_v17 = vmov 2475754826   ;;  %v300_v19 = vmov 2131351028   ;;  %s369_s1 = inlined_call_operand.vmem [shape: u32[8,128], index: 1, kind: input, shape index: {}]   ;;  %s370_s0 = inlined_call_operand.vmem [shape: u32[8,128], index: 0, kind: input, shape index: {}]   ;;  %s371_s3 = inlined_call_operand.vmem [shape: f32[1,128], index: 3, kind: input, shape index: {}]   ;;  %s372_s2 = inlined_call_operand.vmem [shape: f32[1,128], index: 2, kind: input, shape index: {}]   ;;  %s373_s4 = inlined_call_operand.vmem [shape: f32[16,128], index: 4, kind: output, shape index: {}]  }
   0x1   :  { %v22_v0 = vld [vmem:[%s369_s1] sm:$0xff]  ;;  %v301_v21 = vmov 2102212464   ;;  %v302_v23 = vmov 920167782  }
   0x2   :  { %v23_v1 = vshrl.u32 %v22_v0, 8  ;;  %v17_v28 = vld [vmem:[%s370_s0] sm:$0xff]  ;;  %v303_v32 = vmov 1326507024  }
   0x3   :  { %v18_v39 = vshrl.u32 %v17_v28, 8 }
   0x4   :  { %v24_v2 = vcvt.s32.f32 %v23_v1 }
   0x5   :  { %v19_v55 = vcvt.s32.f32 %v18_v39 }
   0x6   :  { %v25_v3 = vmul.f32 5.9604645e-08, %v24_v2 }
   0x7   :  { %v20_v60 = vmul.f32 5.9604645e-08, %v19_v55 }
   0x8   :  { %v332_v4 = vmul.f32 6.2831855, %v25_v3 }
   0x9   :  { %v21_v63 = vsub.f32 1.0, %v20_v60 }
   0xa   :  { %v40_v5 = vand.u32 2139095040, %v332_v4  ;;  %v37_v8 = vand.u32 2147483647, %v332_v4  ;;  %vm39_vm7 = vcmp.lt.s32.totalorder %v332_v4, 0 }
   0xb   :  { %290 = vlog2.f32 %v21_v63 }
   0xc   :  { %v41_v6 = vshrl.u32 %v40_v5, 23  ;;  %v44_v11 = vand.u32 8388607, %v37_v8  ;;  %vm38_vm8 = vcmp.le.f32.partialorder %v37_v8, 0.7853982 }
   0xe   :  { %v270_v7 = vadd.s32 4294967169, %v41_v6  ;;  %v45_v25 = vor.u32 8388608, %v44_v11 }
  0x10   :  { %v47_v9 = vadd.s32 1, %v270_v7  ;;  %v85_v40 = vshll.u32 %v45_v25, 8 }
  0x12   :  { %vm48_vm0 = vcmp.gt.s32.totalorder %v47_v9, 0 }
  0x13   :  { %v49_v10 = vsel %vm48_vm0, %v47_v9, 0 }
  0x14   :  { %v51_v12 = vand.u32 31, %v49_v10  ;;  %v50_v13 = vshrl.u32 %v49_v10, 5 }
  0x16   :  { %v52_v14 = vsub.s32 32, %v51_v12  ;;  %v54_v16 = vshll.u32 %v298_v15, %v51_v12  ;;  %v57_v18 = vshll.u32 %v299_v17, %v51_v12  ;;  %v60_v20 = vshll.u32 %v300_v19, %v51_v12 }
  0x17   :  { %v63_v22 = vshll.u32 %v301_v21, %v51_v12  ;;  %v66_v24 = vshll.u32 %v302_v23, %v51_v12  ;;  %vm69_vm1 = vcmp.lt.s32.totalorder %v50_v13, 1  ;;  %vm72_vm2 = vcmp.lt.s32.totalorder %v50_v13, 4 }
  0x18   :  { %v55_v26 = vshrl.u32 %v299_v17, %v52_v14  ;;  %v58_v27 = vshrl.u32 %v300_v19, %v52_v14  ;;  %v53_v29 = vshrl.u32 %v298_v15, %v52_v14  ;;  %v61_v30 = vshrl.u32 %v301_v21, %v52_v14  ;;  %v291_v11 = vpop.eup %290 }
  0x19   :  { %v64_v31 = vshrl.u32 %v302_v23, %v52_v14  ;;  %v67_v33 = vshrl.u32 %v303_v32, %v52_v14  ;;  %vm71_vm3 = vcmp.lt.s32.totalorder %v50_v13, 3  ;;  %vm70_vm4 = vcmp.lt.s32.totalorder %v50_v13, 2 }
  0x1a   :  { %v56_v34 = vor.u32 %v55_v26, %v54_v16  ;;  %v59_v35 = vor.u32 %v58_v27, %v57_v18  ;;  %v62_v36 = vor.u32 %v61_v30, %v60_v20  ;;  %v27_v16 = vmul.f32 0.6931472, %v291_v11 }
  0x1b   :  { %v65_v37 = vor.u32 %v64_v31, %v63_v22  ;;  %v68_v38 = vor.u32 %v67_v33, %v66_v24 }
  0x1c   :  { %v73_v41 = vsel %vm69_vm1, %v53_v29, %v56_v34  ;;  %v74_v42 = vsel %vm72_vm2, %v62_v36, 2102212464  ;;  %v77_v43 = vsel %vm69_vm1, %v56_v34, %v59_v35  ;;  %v81_v47 = vsel %vm69_vm1, %v59_v35, %v62_v36 }
  0x1d   :  { %v78_v44 = vsel %vm72_vm2, %v65_v37, 920167782  ;;  %v75_v45 = vsel %vm71_vm3, %v59_v35, %v74_v42  ;;  %v82_v48 = vsel %vm72_vm2, %v68_v38, 1326507024  ;;  %v28_v21 = vmul.f32 -2.0, %v27_v16 }
  0x1e   :  { %v79_v46 = vsel %vm71_vm3, %v62_v36, %v78_v44  ;;  %v83_v50 = vsel %vm71_vm3, %v65_v37, %v82_v48  ;;  %v76_v51 = vsel %vm70_vm4, %v73_v41, %v75_v45  ;;  %vm129_vm1 = vweird.f32 %v332_v4 }
  0x1f   :  { %v80_v49 = vsel %vm70_vm4, %v77_v43, %v79_v46  ;;  %v84_v52 = vsel %vm70_vm4, %v81_v47, %v83_v50  ;;  %v92_v58 = vmul.u32 %v85_v40, %v76_v51  ;;  %292 = vrsqrt.f32 %v28_v21  ;;  %v278_v51 = vld [vmem:[%s371_s3] ss:$0 sm:$0xff] }
  0x20   :  { %v341_v53 = vmul.u32.u64.low %v85_v40, %v80_v49  ;;  %v342_v54 = vmul.u32.u64.high %v85_v40, %v80_v49, %v341_v53  ;;  %v344_v56 = vmul.u32.u64.low %v85_v40, %v84_v52  ;;  %v345_v57 = vmul.u32.u64.high %v85_v40, %v84_v52, %v344_v56 }
  0x21   :  { %vm31_vm9 = vcmp.eq.f32.partialorder %v28_v21, inf  ;;  %vm33_vm10 = vcmp.eq.f32.partialorder %v28_v21, 0.0  ;;  %v34_v38 = vand.u32 2147483648, %v28_v21 }
  0x22   :  { %v95_v59 = vadd.s32 1, %v342_v54  ;;  %vm94_vm5 = vc.u32 %v345_v57, %v341_v53  ;;  %v93_v10 = vadd.s32 %v341_v53, %v345_v57 }
  0x24   :  { %v96_v61 = vsel %vm94_vm5, %v95_v59, %v342_v54 }
  0x25   :  { %v97_v62 = vadd.s32 %v96_v61, %v92_v58 }
  0x27   :  { %v98_v0 = vadd.s32 536870912, %v97_v62 }
  0x29   :  { %v99_v1 = vshrl.u32 %v98_v0, 30 }
  0x2b   :  { %v100_v2 = vshll.u32 %v99_v1, 30  ;;  %v123_v26 = vsub.s32 4, %v99_v1 }
  0x2c   :  { %v293_v33 = vpop.eup %292 }
  0x2d   :  { %v101_v3 = vsub.s32 %v97_v62, %v100_v2  ;;  %v124_v29 = vsel %vm39_vm7, %v123_v26, %v99_v1  ;;  %v30_v36 = vmul.f32 %v293_v33, %v28_v21 }
  0x2e   :  { %v126_v31 = vsel %vm38_vm8, 0, %v124_v29 }
  0x2f   :  { %v103_v5 = vsub.s32 0, %v101_v3  ;;  %v234_v32 = vadd.s32 3, %v126_v31  ;;  %v130_v34 = vand.u32 3, %v126_v31  ;;  %v32_v39 = vsel %vm31_vm9, %v28_v21, %v30_v36 }
  0x30   :  { %v35_v44 = vsel %vm33_vm10, %v34_v38, %v32_v39 }
  0x31   :  { %v271_v6 = vmin.u32 %v103_v5, %v101_v3  ;;  %v235_v35 = vand.u32 3, %v234_v32  ;;  %vm135_vm11 = vcmp.eq.s32.totalorder %v130_v34, 2  ;;  %vm132_vm13 = vcmp.eq.s32.totalorder %v130_v34, 0 }
  0x32   :  { %vm131_vm15 = vcmp.lt.s32.totalorder %v130_v34, 2 }
  0x33   :  { %v105_v7 = vclz %v271_v6  ;;  %vm240_vm12 = vcmp.eq.s32.totalorder %v235_v35, 2  ;;  %vm237_vm14 = vcmp.eq.s32.totalorder %v235_v35, 0  ;;  %vm236_vm0 = vcmp.lt.s32.totalorder %v235_v35, 2 }
  0x35   :  { %v272_v9 = vadd.s32 4294967294, %v105_v7 }
  0x37   :  { %vm273_vm6 = vcmp.lt.s32.totalorder %v272_v9, 0 }
  0x38   :  { %v108_v12 = vsel %vm273_vm6, 0, %v272_v9 }
  0x39   :  { %v109_v13 = vsub.s32 32, %v108_v12  ;;  %v110_v14 = vshll.u32 %v101_v3, %v108_v12  ;;  %v113_v15 = vsub.s32 4294967266, %v108_v12 }
  0x3b   :  { %v111_v17 = vshrl.u32 %v93_v10, %v109_v13  ;;  %v114_v18 = vadd.s32 127, %v113_v15 }
  0x3d   :  { %v112_v19 = vor.u32 %v111_v17, %v110_v14  ;;  %v115_v20 = vshll.u32 %v114_v18, 23 }
  0x3f   :  { %v116_v22 = vor.u32 4788187, %v115_v20  ;;  %v119_v23 = vcvt.s32.f32 %v112_v19 }
  0x41   :  { %v117_v24 = vand.u32 2147483647, %v116_v22 }
  0x43   :  { %v120_v25 = vmul.f32 %v119_v23, %v117_v24 }
  0x45   :  { %v121_v27 = vxor.u32 2147483648, %v120_v25 }
  0x47   :  { %v122_v28 = vsel %vm39_vm7, %v121_v27, %v120_v25 }
  0x48   :  { %v125_v30 = vsel %vm38_vm8, %v332_v4, %v122_v28  ;;  %v279_v4 = vld [vmem:[%s372_s2] ss:$0 sm:$0xff] }
  0x49   :  { %294 = vcosq.f32 %v125_v30 }
  0x4a   :  { %296 = vsinq.f32 %v125_v30 }
  0x56   :  { %v295_v37 = vpop.eup %294 }
  0x57   :  { %v297_v8 = vpop.eup %296  ;;  %v136_v40 = vxor.u32 2147483648, %v295_v37 }
  0x58   :  { %v133_v41 = vxor.u32 2147483648, %v297_v8 }
  0x59   :  { %v137_v42 = vsel %vm135_vm11, %v136_v40, %v297_v8  ;;  %v242_v43 = vsel %vm240_vm12, %v136_v40, %v297_v8 }
  0x5a   :  { %v134_v45 = vsel %vm132_vm13, %v295_v37, %v133_v41  ;;  %v239_v46 = vsel %vm237_vm14, %v295_v37, %v133_v41 }
  0x5b   :  { %v138_v47 = vsel %vm131_vm15, %v134_v45, %v137_v42  ;;  %v243_v48 = vsel %vm236_vm0, %v239_v46, %v242_v43 }
  0x5c   :  { %v139_v49 = vsel %vm129_vm1, nan, %v138_v47  ;;  %v244_v50 = vsel %vm129_vm1, nan, %v243_v48 }
  0x5d   :  { %v140_v52 = vmul.f32 %v139_v49, %v35_v44  ;;  %v245_v53 = vmul.f32 %v244_v50, %v35_v44 }
  0x5f   :  { %v254_v54 = vmul.f32 %v278_v51, %v140_v52  ;;  %v263_v55 = vmul.f32 %v278_v51, %v245_v53 }
  0x61   :  { %v261_v56 = vadd.f32 %v279_v4, %v254_v54  ;;  %v264_v57 = vadd.f32 %v279_v4, %v263_v55 }
  0x63   :  { %262 = vst [vmem:[%s373_s4] sm:$0xff] %v261_v56  ;;  %265 = vst [vmem:[%s373_s4 + $0x8] sm:$0xff] %v264_v57 }

</bundles_post_ra>
